<compile_context>
chip_gen: v6e
topology: v6e:2x2x1
jax: 0.10.0
libtpu: 0.0.40
codegen_flags: <defaults>
</compile_context>

<pallas_src>
import functools

import numpy as np
import jax
import jax.numpy as jnp
from jax.experimental import pallas as pl
from jax.experimental.pallas import tpu as pltpu


# --------------------------------------------------------------------------- #
# kernels
# --------------------------------------------------------------------------- #
def _stats_kernel(x_ref, sum_ref, sumsq_ref, *, L, Lt, n_l_per_split, needs_mask):
    """Accumulate per-(b, c) sum(x) and sum(x*x) across the trailing L axis.

    x_ref:            (Ct, Lt) native dtype
    sum_ref/sumsq_ref: (Ct, 1) f32, resident across the trailing grid axis.
    """
    l = pl.program_id(3)

    @pl.when(l == 0)
    def _():
        sum_ref[...] = jnp.zeros_like(sum_ref)
        sumsq_ref[...] = jnp.zeros_like(sumsq_ref)

    x = x_ref[...].astype(jnp.float32)                       # (Ct, Lt)
    if needs_mask:
        # Global element offset of this (split, l) block; out-of-range lanes
        # (tail of L, or clamped phantom blocks of the parallel split) -> 0.
        start = (pl.program_id(2) * n_l_per_split + l) * Lt
        lane = jax.lax.broadcasted_iota(jnp.int32, x.shape, 1)
        x = jnp.where(lane + start < L, x, 0.0)
    sum_ref[...] += jnp.sum(x, axis=1, keepdims=True)        # (Ct, 1)
    sumsq_ref[...] += jnp.sum(x * x, axis=1, keepdims=True)  # (Ct, 1)


def _norm_kernel(scale_ref, shift_ref, x_ref, out_ref):
    """y = x * scale + shift; scale/shift are per-(b, c) sublane operands."""
    x = x_ref[...].astype(jnp.float32)                       # (Ct, Lt)
    y = x * scale_ref[...] + shift_ref[...]                  # (Ct, 1) broadcast
    out_ref[...] = y.astype(out_ref.dtype)


# --------------------------------------------------------------------------- #
# tiling helpers
# --------------------------------------------------------------------------- #
def _vmem_cap_bytes():
    """Chip-aware usable-VMEM cap (~75% of physical, >=32 MiB)."""
    try:
        phys = int(pltpu.get_tpu_info().vmem_capacity_bytes)
    except Exception:
        phys = 64 << 20        # conservative fallback (works on every generation)
    return max(32 << 20, (phys * 3) // 4)


def _round_up(n, m):
    return ((n + m - 1) // m) * m


def _pick_tiles(C, L, budget_f32_bytes, max_ct=2048):
    """Choose (Ct, Lt) for a (Ct, Lt) tile of a (B, C, L) array.

    Prefers Lt == L (fully contiguous rows per (b, c-tile)); shrinks Ct first
    (unit 8).  Only when even the smallest valid Ct with a full row exceeds the
    f32 byte budget is L split into multiples of 128 (callers mask the tail).
    """
    budget_elems = max(8 * 128, budget_f32_bytes // 4)
    c_tiles = [t for t in range(8, min(C, max_ct) + 1, 8) if C % t == 0]
    if not c_tiles:
        c_tiles = [C]                      # full-C block (valid: equals array dim)

    fitting = [ct for ct in c_tiles if ct * L <= budget_elems]
    if fitting:
        return max(fitting), L             # full-L contiguous rows

    ct = min(c_tiles)                      # smallest Ct -> longest per-row runs
    lt = max(128, (budget_elems // ct) // 128 * 128)
    if lt >= L:
        return ct, L
    return ct, min(lt, _round_up(L, 128))


# --------------------------------------------------------------------------- #
# forward
# --------------------------------------------------------------------------- #
def switchable_norm_nd(x, weight, bias, mean_weight, var_weight,
                       running_mean, running_var,
                       eps=1e-8, momentum=0.9,
                       stats_block_bytes=None, norm_block_bytes=None):
    """Training-mode SwitchableNormND forward (using_bn=True,
    using_moving_average=True).  Returns (y, new_running_mean, new_running_var)."""
    B, C = x.shape[:2]
    shape2 = x.shape[2:]
    L = int(np.prod(shape2)) if len(shape2) else 1
    x3 = x.reshape(B, C, L)                       # native dtype; no wrapper upcast
    itemsize = np.dtype(x.dtype).itemsize

    cap = _vmem_cap_bytes()
    # Per-phase tile budgets (f32 bytes of one tile).  Phase 1 streams a single
    # operand and carries ~2 tile-sized f32 temporaries; phase 2 streams x and y.
    if stats_block_bytes is None:
        stats_block_bytes = min(16 << 20, (cap - (4 << 20)) // 4)
    if norm_block_bytes is None:
        norm_block_bytes = min(8 << 20, (cap - (4 << 20)) // 6)

    # ---------------- phase 1: per-(B, C) sum / sum-of-squares ----------------
    Ct1, Lt1 = _pick_tiles(C, L, stats_block_bytes)
    n_c1 = C // Ct1                               # Ct1 divides C by construction
    n_l1 = pl.cdiv(L, Lt1)                        # number of valid L blocks
    # Guarantee >=2 "parallel" units for dual-TC chips (v7x) when B*n_c == 1.
    n_split = 2 if (B * n_c1 == 1 and n_l1 >= 2) else 1
    n_lps = pl.cdiv(n_l1, n_split)                # L blocks per split
    needs_mask = (n_split * n_lps * Lt1 != L)     # tail and/or phantom blocks

    if n_split == 1:
        x1_map = lambda b, c, s, l: (b, c, l)
    else:
        last_blk = n_l1 - 1                       # clamp phantom blocks (masked to 0)
        x1_map = lambda b, c, s, l: (b, c, jnp.minimum(s * n_lps + l, last_blk))

    blk1_nat = Ct1 * Lt1 * itemsize
    blk1_f32 = Ct1 * Lt1 * 4
    # double-buffered input + in-kernel f32 temporaries (cast, x*x) +
    # lane-padded (Ct,1) accumulator buffers + compiler scratch margin
    vmem1 = int(min(cap, max(32 << 20,
                             2 * blk1_nat + 2 * blk1_f32
                             + 4 * Ct1 * 128 * 4 + (4 << 20))))

    stats_kernel = functools.partial(_stats_kernel, L=L, Lt=Lt1,
                                     n_l_per_split=n_lps, needs_mask=needs_mask)

    stats_sum, stats_sq = pl.pallas_call(
        stats_kernel,
        grid=(B, n_c1, n_split, n_lps),
        in_specs=[pl.BlockSpec((None, Ct1, Lt1), x1_map)],
        out_specs=(
            pl.BlockSpec((None, None, Ct1, 1), lambda b, c, s, l: (b, s, c, 0)),
            pl.BlockSpec((None, None, Ct1, 1), lambda b, c, s, l: (b, s, c, 0)),
        ),
        out_shape=(
            jax.ShapeDtypeStruct((B, n_split, C, 1), jnp.float32),
            jax.ShapeDtypeStruct((B, n_split, C, 1), jnp.float32),
        ),
        compiler_params=pltpu.CompilerParams(
            dimension_semantics=("parallel", "parallel", "parallel", "arbitrary"),
            vmem_limit_bytes=vmem1,
        ),
    )(x3)

    # ---------------- tiny O(B*C) glue: mixing, scale/shift, running stats ----
    sum_ = jnp.sum(stats_sum[:, :, :, 0], axis=1)             # (B, C)
    sumsq = jnp.sum(stats_sq[:, :, :, 0], axis=1)             # (B, C)

    cnt = jnp.float32(L)
    mean_in = sum_ / cnt
    # torch.var default is unbiased (L-1); L == 1 would be NaN in torch — we
    # return 0 variance instead of a compile-time inf.
    bessel = float(L - 1) if L > 1 else 1.0
    # E[x^2]-E[x]^2 can go slightly negative in f32: clamp before use.
    var_in = jnp.maximum((sumsq - cnt * mean_in * mean_in) / bessel, 0.0)

    mean_ln = jnp.mean(mean_in, axis=1, keepdims=True)        # (B, 1)
    temp = var_in + mean_in * mean_in
    var_ln = jnp.mean(temp, axis=1, keepdims=True) - mean_ln * mean_ln
    mean_bn = jnp.mean(mean_in, axis=0, keepdims=True)        # (1, C)
    var_bn = jnp.mean(temp, axis=0, keepdims=True) - mean_bn * mean_bn

    mw = jax.nn.softmax(mean_weight.astype(jnp.float32))
    vw = jax.nn.softmax(var_weight.astype(jnp.float32))
    mean = mw[0] * mean_in + mw[1] * mean_ln + mw[2] * mean_bn   # (B, C)
    var = vw[0] * var_in + vw[1] * var_ln + vw[2] * var_bn       # (B, C)
    var = jnp.maximum(var, 0.0)                                  # guard rsqrt

    inv_std = jax.lax.rsqrt(var + eps)
    gamma = weight.reshape(1, C).astype(jnp.float32)
    beta = bias.reshape(1, C).astype(jnp.float32)
    scale = gamma * inv_std                                      # (B, C)
    shift = beta - mean * scale
    scale3 = scale.reshape(B, C, 1)
    shift3 = shift.reshape(B, C, 1)

    # ---------------- phase 2: normalize (one mul + one add per element) ------
    Ct2, Lt2 = _pick_tiles(C, L, norm_block_bytes)
    n_c2 = C // Ct2
    n_l2 = pl.cdiv(L, Lt2)                      # boundary block writes are dropped
    blk2_nat = Ct2 * Lt2 * itemsize
    blk2_f32 = Ct2 * Lt2 * 4
    # double-buffered x + y, f32 temporaries, lane-padded scale/shift buffers
    vmem2 = int(min(cap, max(32 << 20,
                             4 * blk2_nat + 2 * blk2_f32
                             + 4 * Ct2 * 128 * 4 + (4 << 20))))

    out = pl.pallas_call(
        _norm_kernel,
        grid=(B, n_c2, n_l2),
        in_specs=[
            pl.BlockSpec((None, Ct2, 1), lambda b, c, l: (b, c, 0)),
            pl.BlockSpec((None, Ct2, 1), lambda b, c, l: (b, c, 0)),
            pl.BlockSpec((None, Ct2, Lt2), lambda b, c, l: (b, c, l)),
        ],
        out_specs=pl.BlockSpec((None, Ct2, Lt2), lambda b, c, l: (b, c, l)),
        out_shape=jax.ShapeDtypeStruct((B, C, L), x.dtype),
        compiler_params=pltpu.CompilerParams(
            dimension_semantics=("parallel", "parallel", "parallel"),
            vmem_limit_bytes=vmem2,
        ),
    )(scale3, shift3, x3)

    # running-buffer moving-average update (using_moving_average=True) — JAX glue
    mean_bn3 = mean_bn.reshape(1, C, 1)
    var_bn3 = var_bn.reshape(1, C, 1)
    new_running_mean = momentum * running_mean + (1.0 - momentum) * mean_bn3
    new_running_var = momentum * running_var + (1.0 - momentum) * var_bn3

    return out.reshape(B, C, *shape2), new_running_mean, new_running_var


# --------------------------------------------------------------------------- #
# pure-JAX reference (mirrors the PyTorch training-mode forward)
# --------------------------------------------------------------------------- #
def _reference(x, weight, bias, mean_weight, var_weight,
               running_mean, running_var, eps=1e-8, momentum=0.9):
    B, C = x.shape[:2]
    shape2 = x.shape[2:]
    x3 = x.reshape(B, C, -1).astype(jnp.float32)
    mean_in = x3.mean(2, keepdims=True)
    var_in = x3.var(2, keepdims=True, ddof=1)                 # torch unbiased var
    mean_ln = mean_in.mean(1, keepdims=True)
    temp = var_in + mean_in ** 2
    var_ln = temp.mean(1, keepdims=True) - mean_ln ** 2
    mean_bn = mean_in.mean(0, keepdims=True)
    var_bn = temp.mean(0, keepdims=True) - mean_bn ** 2
    mw = jax.nn.softmax(mean_weight.astype(jnp.float32))
    vw = jax.nn.softmax(var_weight.astype(jnp.float32))
    mean = mw[0] * mean_in + mw[1] * mean_ln + mw[2] * mean_bn
    var = vw[0] * var_in + vw[1] * var_ln + vw[2] * var_bn
    y = (x3 - mean) / jnp.sqrt(var + eps)
    y = y * weight.reshape(1, C, 1).astype(jnp.float32) \
        + bias.reshape(1, C, 1).astype(jnp.float32)
    new_rm = momentum * running_mean + (1.0 - momentum) * mean_bn
    new_rv = momentum * running_var + (1.0 - momentum) * var_bn
    return y.reshape(B, C, *shape2).astype(x.dtype), new_rm, new_rv


def _check(x, C, stats_bb=None, norm_bb=None):
    weight = jnp.ones((1, C, 1), jnp.float32)
    bias = jnp.zeros((1, C, 1), jnp.float32)
    mean_weight = jnp.ones((3,), jnp.float32)
    var_weight = jnp.ones((3,), jnp.float32)
    rm = jnp.zeros((1, C, 1), jnp.float32)
    rv = jnp.zeros((1, C, 1), jnp.float32)
    y, nrm, nrv = switchable_norm_nd(
        x, weight, bias, mean_weight, var_weight, rm, rv,
        eps=1e-8, momentum=0.9,
        stats_block_bytes=stats_bb, norm_block_bytes=norm_bb)
    jax.block_until_ready((y, nrm, nrv))
    y_r, nrm_r, nrv_r = _reference(
        x, weight, bias, mean_weight, var_weight, rm, rv, eps=1e-8, momentum=0.9)
    np.testing.assert_allclose(np.asarray(y), np.asarray(y_r), rtol=1e-4, atol=1e-4)
    np.testing.assert_allclose(np.asarray(nrm), np.asarray(nrm_r), rtol=1e-4, atol=1e-5)
    np.testing.assert_allclose(np.asarray(nrv), np.asarray(nrv_r), rtol=1e-4, atol=1e-5)


if __name__ == "__main__":
    # TODO(synk): eval-mode forward (running-stat branch) is not implemented;
    # this script covers the training-mode forward only.
    key = jax.random.PRNGKey(0)

    # 1) primary shape: NCHW, default (chip-aware) tile budgets, full-L tiles
    B, C, H, W = 2, 4, 16, 16
    x = jax.random.normal(key, (B, C, H, W), dtype=jnp.float32)
    _check(x, C)

    # 2) tiny budgets -> exercises the tiled, exact L reduction (n_l > 1)
    x2 = jax.random.normal(jax.random.PRNGKey(1), (2, 8, 16, 64), jnp.float32)
    _check(x2, 8, stats_bb=16 * 1024, norm_bb=16 * 1024)

    # 3) B=1 with odd L=655 -> exercises the 2-way parallel L split (dual-TC),
    #    the masked reduction tail, and boundary-block writes in the norm pass
    x3 = jax.random.normal(jax.random.PRNGKey(2), (1, 8, 5, 131), jnp.float32)
    _check(x3, 8, stats_bb=16 * 1024, norm_bb=16 * 1024)

    print("KERNEL_OK")
</pallas_src>

<mosaic_0001>
module attributes {stable_mosaic.version = 11 : i64} {
  func.func @_stats_kernel(%arg0: i32, %arg1: i32, %arg2: i32, %arg3: i32, %arg4: memref<1x4x256xf32, #tpu.memory_space<vmem>>, %arg5: memref<1x1x4x1xf32, #tpu.memory_space<vmem>>, %arg6: memref<1x1x4x1xf32, #tpu.memory_space<vmem>>) attributes {dimension_semantics = [#tpu.dimension_semantics<parallel>, #tpu.dimension_semantics<parallel>, #tpu.dimension_semantics<parallel>, #tpu.dimension_semantics<arbitrary>], iteration_bounds = array<i64: 2, 1, 1, 1>, scalar_prefetch = 0 : i64, scratch_operands = 0 : i64, tpu.core_type = #tpu.core_type<tc>, window_params = [{transform_indices = @transform_0, window_bounds = array<i64: 1, 4, 256>}, {transform_indices = @transform_1, window_bounds = array<i64: 1, 1, 4, 1>}, {transform_indices = @transform_2, window_bounds = array<i64: 1, 1, 4, 1>}]} {
    %c0_i32 = arith.constant 0 : i32
    %0 = arith.cmpi eq, %arg3, %c0_i32 : i32
    %1 = arith.extui %0 : i1 to i32
    %c0_i32_0 = arith.constant 0 : i32
    %2 = arith.cmpi ne, %1, %c0_i32_0 : i32
    scf.if %2 {
      %cst_20 = arith.constant 0.000000e+00 : f32
      %22 = vector.broadcast %cst_20 : f32 to vector<4x1xf32>
      %c0_21 = arith.constant 0 : index
      %c0_22 = arith.constant 0 : index
      %c0_23 = arith.constant 0 : index
      %c0_24 = arith.constant 0 : index
      %23 = vector.load %arg5[%c0_21, %c0_22, %c0_23, %c0_24] : memref<1x1x4x1xf32, #tpu.memory_space<vmem>>, vector<1x1x4x1xf32>
      %24 = vector.shape_cast %23 : vector<1x1x4x1xf32> to vector<4x1xf32>
      %25 = vector.shape_cast %22 : vector<4x1xf32> to vector<1x1x4x1xf32>
      tpu.vector_store %arg5[%c0_21, %c0_22, %c0_23, %c0_24], %25 {strides = array<i32>} : memref<1x1x4x1xf32, #tpu.memory_space<vmem>>, vector<1x1x4x1xf32>,
      %cst_25 = arith.constant 0.000000e+00 : f32
      %26 = vector.broadcast %cst_25 : f32 to vector<4x1xf32>
      %c0_26 = arith.constant 0 : index
      %c0_27 = arith.constant 0 : index
      %c0_28 = arith.constant 0 : index
      %c0_29 = arith.constant 0 : index
      %27 = vector.load %arg6[%c0_26, %c0_27, %c0_28, %c0_29] : memref<1x1x4x1xf32, #tpu.memory_space<vmem>>, vector<1x1x4x1xf32>
      %28 = vector.shape_cast %27 : vector<1x1x4x1xf32> to vector<4x1xf32>
      %29 = vector.shape_cast %26 : vector<4x1xf32> to vector<1x1x4x1xf32>
      tpu.vector_store %arg6[%c0_26, %c0_27, %c0_28, %c0_29], %29 {strides = array<i32>} : memref<1x1x4x1xf32, #tpu.memory_space<vmem>>, vector<1x1x4x1xf32>,
    } else {
    }
    %c0 = arith.constant 0 : index
    %c0_1 = arith.constant 0 : index
    %c0_2 = arith.constant 0 : index
    %3 = vector.load %arg4[%c0, %c0_1, %c0_2] : memref<1x4x256xf32, #tpu.memory_space<vmem>>, vector<1x4x256xf32>
    %4 = vector.shape_cast %3 : vector<1x4x256xf32> to vector<4x256xf32>
    %c0_3 = arith.constant 0 : index
    %c0_4 = arith.constant 0 : index
    %c0_5 = arith.constant 0 : index
    %c0_6 = arith.constant 0 : index
    %5 = vector.load %arg5[%c0_3, %c0_4, %c0_5, %c0_6] : memref<1x1x4x1xf32, #tpu.memory_space<vmem>>, vector<1x1x4x1xf32>
    %6 = vector.shape_cast %5 : vector<1x1x4x1xf32> to vector<4x1xf32>
    %cst = arith.constant dense<0.000000e+00> : vector<4xf32>
    %7 = vector.multi_reduction <add>, %4, %cst [1] : vector<4x256xf32> to vector<4xf32>
    %8 = vector.shape_cast %7 : vector<4xf32> to vector<4x1xf32>
    %9 = arith.addf %6, %8 : vector<4x1xf32>
    %c0_7 = arith.constant 0 : index
    %c0_8 = arith.constant 0 : index
    %c0_9 = arith.constant 0 : index
    %c0_10 = arith.constant 0 : index
    %10 = vector.load %arg5[%c0_7, %c0_8, %c0_9, %c0_10] : memref<1x1x4x1xf32, #tpu.memory_space<vmem>>, vector<1x1x4x1xf32>
    %11 = vector.shape_cast %10 : vector<1x1x4x1xf32> to vector<4x1xf32>
    %12 = vector.shape_cast %9 : vector<4x1xf32> to vector<1x1x4x1xf32>
    tpu.vector_store %arg5[%c0_7, %c0_8, %c0_9, %c0_10], %12 {strides = array<i32>} : memref<1x1x4x1xf32, #tpu.memory_space<vmem>>, vector<1x1x4x1xf32>,
    %c0_11 = arith.constant 0 : index
    %c0_12 = arith.constant 0 : index
    %c0_13 = arith.constant 0 : index
    %c0_14 = arith.constant 0 : index
    %13 = vector.load %arg6[%c0_11, %c0_12, %c0_13, %c0_14] : memref<1x1x4x1xf32, #tpu.memory_space<vmem>>, vector<1x1x4x1xf32>
    %14 = vector.shape_cast %13 : vector<1x1x4x1xf32> to vector<4x1xf32>
    %15 = arith.mulf %4, %4 : vector<4x256xf32>
    %cst_15 = arith.constant dense<0.000000e+00> : vector<4xf32>
    %16 = vector.multi_reduction <add>, %15, %cst_15 [1] : vector<4x256xf32> to vector<4xf32>
    %17 = vector.shape_cast %16 : vector<4xf32> to vector<4x1xf32>
    %18 = arith.addf %14, %17 : vector<4x1xf32>
    %c0_16 = arith.constant 0 : index
    %c0_17 = arith.constant 0 : index
    %c0_18 = arith.constant 0 : index
    %c0_19 = arith.constant 0 : index
    %19 = vector.load %arg6[%c0_16, %c0_17, %c0_18, %c0_19] : memref<1x1x4x1xf32, #tpu.memory_space<vmem>>, vector<1x1x4x1xf32>
    %20 = vector.shape_cast %19 : vector<1x1x4x1xf32> to vector<4x1xf32>
    %21 = vector.shape_cast %18 : vector<4x1xf32> to vector<1x1x4x1xf32>
    tpu.vector_store %arg6[%c0_16, %c0_17, %c0_18, %c0_19], %21 {strides = array<i32>} : memref<1x1x4x1xf32, #tpu.memory_space<vmem>>, vector<1x1x4x1xf32>,
    return
  }
  func.func @transform_0(%arg0: i32, %arg1: i32, %arg2: i32, %arg3: i32) -> (i32, i32, i32) {
    %c0_i32 = arith.constant 0 : i32
    return %arg0, %arg1, %arg3 : i32, i32, i32
  }
  func.func @transform_1(%arg0: i32, %arg1: i32, %arg2: i32, %arg3: i32) -> (i32, i32, i32, i32) {
    %c0_i32 = arith.constant 0 : i32
    %c0_i32_0 = arith.constant 0 : i32
    return %arg0, %arg2, %arg1, %c0_i32 : i32, i32, i32, i32
  }
  func.func @transform_2(%arg0: i32, %arg1: i32, %arg2: i32, %arg3: i32) -> (i32, i32, i32, i32) {
    %c0_i32 = arith.constant 0 : i32
    %c0_i32_0 = arith.constant 0 : i32
    return %arg0, %arg2, %arg1, %c0_i32 : i32, i32, i32, i32
  }
}

</mosaic_0001>

<bundles_post_ra>
// kernel: tpu_custom_call.1
= control target key start
LH: loop header
LB: loop body
LE: loop exit
PB: predicated region body
PF: predicated region fallthrough
CT: control target
= control target key end

     0   :  { %8 = vsyncpa [#allocation3], 0  ;;  %s701_s0 = inlined_call_operand.hbm [shape: f32[2,4,256], index: 0, kind: input, shape index: {}]   ;;  %s702_s1 = inlined_call_operand.vmem [shape: f32[2,1,4,1], index: 1, kind: output, shape index: {0}]   ;;  %s703_s2 = inlined_call_operand.vmem [shape: f32[2,1,4,1], index: 2, kind: output, shape index: {1}]  }
   0x1   :  { %10 = vsyncpa [#allocation3 + $0x1], 0  ;;  %s594_s9 = smov 0   ;;  %s596_s10 = smov 0  }
   0x2   :  { %s598_s11 = smov 0   ;;  %s600_s12 = smov 0  }
   0x3   :  { %s602_s13 = smov 0   ;;  %s604_s14 = smov 0  }
   0x4 LB: > { %s426_s15 = sadd.s32 4294967295, %s575_s14   ;;  %s42_s16 = sadd.s32 1, %s571_s13  ;;  %s575_s14 = sphi %s604_s14, %s16_s14   ;;  %s571_s13 = sphi %s602_s13, %s711_s13   ;;  %s567_s12 = sphi %s600_s12, %s710_s12   ;;  %s563_s11 = sphi %s598_s11, %s709_s11   ;;  %s559_s10 = sphi %s596_s10, %s708_s10   ;;  %s555_s9 = sphi %s594_s9, %s707_s9  }
   0x5   : > { %p44_p0 = scmp.ge.s32.totalorder %s42_s16, 2  ;;  %s53_s17 = sadd.s32 1, %s563_s11 }
   0x6   : > { %p60_p1 = scmp.ne.s32.totalorder %s563_s11, %s559_s10  ;;  %p61_p2 = scmp.eq.s32.totalorder %s575_s14, 0 }
   0x7   : > { %s713_s16 = smov (%p44_p0, %s42_s16), 0  ;;  %p66_p4 = scmp.ne.s32.totalorder %s559_s10, %s555_s9 }
   0x8   : > { %p630_p3 = por %p61_p2, %p60_p1  ;;  %s46_s19 = ssub.s32 %s571_s13, %s713_s16 }
   0x9   : > { %p67_p5 = scmp.eq.s32.totalorder %s426_s15, 0  ;;  %p51_p6 = scmp.eq.s32.totalorder %s46_s19, 0 }
   0xa   : > { %p446_p8 = scmp.lt.s32.totalorder %s575_s14, 2  ;;  %s150_s22 = sand.u32 1, %s563_s11  }
   0xb   : > { %p637_p7 = por %p67_p5, %p66_p4  ;;  %s439_s23 = sshll.u32 %s571_s13, 7 }
   0xc   : > { %s643_s21 = scalar_select %p51_p6, %s563_s11, %s53_s17  }
   0xd   : > { %s430_s24 = sshll.u32 %s150_s22, 3  ;;  %s164_s27 = scalar_lea.hbm %s701_s0, %s439_s23 }
   0xe   : > { %s154_s28 = scalar_lea.vmem [#allocation2], %s430_s24  ;;  %p652_p9 = pnand %p446_p8, %p630_p3 }
   0xf   : > { %s166_s29 = sshll.u32 %s154_s28, 4  ;;  %p433_p10 = scmp.ge.s32.totalorder %s575_s14, 1  ;;  %s167_s29 = int_to_ptr.vmem [resolvable:$true] %s166_s29 }
  0x10   : > { %p171_p11 = scmp.lt.s32.totalorder %s575_s14, 3  ;;  %s151_s3 = scalar_lea.sflag [#allocation3], %s150_s22 }
  0x11   : > { %p499_p12 = pneg %p652_p9  ;;  %s510_s4 = scalar_lea.vmem %s167_s29, 128 }
  0x12   : > { %p511_p13 = scmp.ne.s32.totalorder %s167_s29, %s510_s4  ;;  %s577_s5 = smov [#allocation2]  }
  0x13   : > { %s515_s6 = sshll.u32 %s577_s5, 4  ;;  %s516_s6 = int_to_ptr.vmem [resolvable:$false] %s515_s6 }
  0x14   : > { %p513_p0 = pnand %p511_p13, %p499_p12  ;;  %s517_s7 = scalar_lea.vmem %s516_s6, 256 }
  0x15   : > { %p518_p2 = scmp.lt.s32.totalorder %s167_s29, %s516_s6  ;;  %p519_p3 = scmp.lt.s32.totalorder %s517_s7, %s510_s4 }
  0x16   : > { %p514_p1 = pneg %p513_p0 }
  0x17   : > { %p520_p4 = por %p519_p3, %p518_p2 }
  0x19   : > { %p521_p5 = pnand %p520_p4, %p514_p1 }
  0x1b   : > { %524 = shalt.err (!%p521_p5)
}
  0x1c   : > { %445 = dma.hbm_to_vmem [thread:$0]  (!%p652_p9), %s164_s27, 128, %s167_s29, %s151_s3  }
  0x1d   : > { %p172_p6 = pnand %p433_p10, %p171_p11 }
  0x1e   : > { %s177_s8 = sand.u32 (!%p172_p6), 1, %s559_s10  }
  0x1f   : > { %175 = sbr.rel (%p172_p6) target bundleno = 188 (0xbc), region = 24  ;;  %s434_s9 = sshll.u32 (!%p172_p6), %s177_s8, 3 }
  0x20   : > { %s178_s15 = scalar_lea.sflag (!%p172_p6), [#allocation3], %s177_s8  ;;  %s181_s17 = scalar_lea.vmem (!%p172_p6), [#allocation2], %s434_s9 }
  0x24   : > { %550 = dma.done.wait (%p637_p7), %s178_s15, 128  }
  0x25   : > { %552 = vsyncadd (%p637_p7), %s178_s15, 4294967168  ;;  %p218_p8 = scmp.lt.s32.totalorder %s567_s12, 1  ;;  %vm242_vm0 = vcmask 3072   ;;  %vm250_vm1 = vcmask 1043456   ;;  %v578_v0 = vmov 0.0   ;;  %v245_v1 = vld [vmem:[%s181_s17] sm:$0xff] }
  0x26   : > { %v248_v2 = vcombine.high %v245_v1, %v245_v1  ;;  %v251_v3 = vsel %vm250_vm1, %v245_v1, 0.0  ;;  %v260_v4 = vmul.f32 %v245_v1, %v245_v1 }
  0x27   : > { %s715_s12 = smov (!%p218_p8, %s567_s12), 1 }
  0x28   : > { %s435_s18 = sshll.u32 %s715_s12, 2  ;;  %v252_v5 = vsel %vm250_vm1, %v248_v2, 0.0  ;;  %v262_v6 = vcombine.high %v260_v4, %v260_v4  ;;  %v264_v7 = vsel %vm250_vm1, %v260_v4, 0.0 }
  0x29   : > { %s227_s23 = scalar_lea.vmem %s702_s1, %s435_s18  ;;  %v253_v8 = vadd.f32 %v252_v5, %v251_v3  ;;  %s237_s24 = scalar_lea.vmem %s703_s2, %s435_s18 }
  0x2a   : > { %243 = vst.msk [vmem:[%s227_s23] sm:$0xf] %vm242_vm0, %v578_v0  ;;  %v265_v9 = vsel %vm250_vm1, %v262_v6, 0.0  ;;  %244 = vst.msk [vmem:[%s237_s24] sm:$0xf] %vm242_vm0, %v578_v0 }
  0x2b   : > { %254 = vadd.xlane.f32.xlu0 %v253_v8  ;;  %v266_v10 = vadd.f32 %v265_v9, %v264_v7 }
  0x2f   : > { %267 = vadd.xlane.f32.xlu0 %v266_v10 }
  0x31   : > { %v246_v11 = vld [vmem:[%s227_s23] sm:$0xf] }
  0x32   : > { %v259_v14 = vld [vmem:[%s237_s24] sm:$0xf] }
  0xb4   : > { %v255_v12 = vpop.xlane.xlu0 %254 }
  0xb5   : > { %v256_v13 = vadd.f32 %v255_v12, %v246_v11 }
  0xb7   : > { %258 = vst.msk [vmem:[%s227_s23] sm:$0xf] %vm242_vm0, %v256_v13 }
  0xb8   : > { %v268_v15 = vpop.xlane.xlu0 %267 }
  0xb9   : > { %v269_v16 = vadd.f32 %v268_v15, %v259_v14 }
  0xbb   : > { %270 = vst.msk [vmem:[%s237_s24] sm:$0xf] %vm242_vm0, %v269_v16 }
  0xbc PF: > { %s16_s14 = sadd.s32 1, %s575_s14   ;;  %s707_s9 = smov %s559_s10 }
  0xbd   : > { %p13_p7 = scmp.ge.s32.totalorder %s16_s14, 4   ;;  %s708_s10 = smov %s563_s11 }
  0xbe   : > { %s709_s11 = smov %s643_s21  ;;  %s710_s12 = smov %s571_s13 }
  0xbf   : > { %s711_s13 = smov %s713_s16  ;;  %15 = sbr.rel (!%p13_p7) target bundleno = 4 (0x4), region = 80 }
  0xc4   :  { %328 = vsyncpa [#allocation3], 1 }
  0xc5   :  { %330 = vsyncpa [#allocation3 + $0x1], 1 }

</bundles_post_ra>
